<compile_context>
chip_gen: v6e
topology: v6e:2x2x1
jax: 0.10.0
libtpu: 0.0.40
codegen_flags: <defaults>
</compile_context>

<pallas_src>
import functools

import jax
import jax.numpy as jnp
from jax import lax
from jax.experimental import pallas as pl
from jax.experimental.pallas import tpu as pltpu

_LANES = 128
_VPU_MIN_D = 256      # below this the rank-1 MXU dot is the cheaper formulation
_MAX_TK = 8192        # per-tile feature width cap (keeps rows small enough to tile N)


def _round_up(a, b):
    return (a + b - 1) // b * b


def _vmem_budget():
    """Generation-aware scoped-VMEM budget and per-buffer x-tile budget."""
    try:
        cap = int(pltpu.get_tpu_info().vmem_capacity_bytes)
    except Exception:
        cap = 64 * 1024 * 1024                    # conservative (v7x per-TC VMEM)
    vmem_limit = min(64 * 1024 * 1024, (cap * 3) // 4)   # 64 MiB v5e/v6e, 48 MiB v7x
    max_tile_bytes = vmem_limit // 4                     # 2x double-buffered x + headroom
    return vmem_limit, max_tile_bytes


# --------------------------------------------------------------------------- #
# Kernels
# --------------------------------------------------------------------------- #
def _mxu_kernel(x_ref, w_ref, b_ref, o_ref):
    # x_ref: (TN, D) native dtype; w_ref: (1, D) f32; b_ref: (1,) f32 in SMEM
    # o_ref: (1, 1, TN) f32 -- lane-dense row of probabilities.
    logits = lax.dot_general(
        w_ref[...].astype(x_ref.dtype), x_ref[...],
        dimension_numbers=(((1,), (1,)), ((), ())),
        preferred_element_type=jnp.float32,
    ) + b_ref[0]
    o_ref[0] = jax.nn.sigmoid(logits).astype(o_ref.dtype)


def _vpu_kernel(x_ref, w_ref, b_ref, o_ref, *scratch,
                n_chunks, tile_k, d_total, k_tiled, ragged):
    # x_ref: (TN, TK) native dtype; w_ref: (1, TK) f32; b_ref: (1,) f32 in SMEM
    # o_ref: (1, 1, TN) f32; scratch: ((TN, 128) f32,) iff k_tiled.
    if k_tiled:
        acc_ref = scratch[0]
        k = pl.program_id(1)

        @pl.when(k == 0)
        def _():
            acc_ref[...] = jnp.zeros_like(acc_ref)

        acc = acc_ref[...]
        col0 = k * tile_k
    else:
        acc = jnp.zeros((x_ref.shape[0], _LANES), jnp.float32)
        col0 = 0

    if ragged:
        lane = lax.broadcasted_iota(jnp.int32, (1, _LANES), 1)

    # Broadcast-multiply-accumulate per 128-lane K chunk (pure VPU work).
    for c in range(n_chunks):
        sl = pl.ds(c * _LANES, _LANES)
        prod = x_ref[:, sl].astype(jnp.float32) * w_ref[:, sl]
        if ragged:
            valid = (col0 + c * _LANES + lane) < d_total
            prod = jnp.where(valid, prod, 0.0)      # kills garbage tail cols
        acc = acc + prod

    def _finish(acc_val):
        ones = jnp.ones((1, _LANES), jnp.float32)
        logits = lax.dot_general(                    # tiny lane-reduce -> (1, TN)
            ones, acc_val,
            dimension_numbers=(((1,), (1,)), ((), ())),
            preferred_element_type=jnp.float32,
        ) + b_ref[0]
        o_ref[0] = jax.nn.sigmoid(logits).astype(o_ref.dtype)

    if k_tiled:
        acc_ref[...] = acc

        @pl.when(k == pl.num_programs(1) - 1)
        def _():
            _finish(acc_ref[...])
    else:
        _finish(acc)


# --------------------------------------------------------------------------- #
# Wrapper
# --------------------------------------------------------------------------- #
def logreg_forward(x, weight, bias=None, *, max_tile_bytes=None, max_tk=_MAX_TK):
    """sigmoid(x @ weight.T + bias).squeeze()  (LogRegModel.forward)

    x: (..., D) array (any float dtype), weight: (1, D), bias: None or (1,).
    Returns f32 probabilities with all size-1 dims squeezed (torch .squeeze()).
    """
    D = x.shape[-1]
    lead_shape = x.shape[:-1]
    x2 = x.reshape(-1, D)
    N = x2.shape[0]
    assert weight.shape == (1, D), weight.shape
    dtype_size = jnp.dtype(x2.dtype).itemsize

    vmem_limit, default_tile = _vmem_budget()
    if max_tile_bytes is None:
        max_tile_bytes = default_tile

    # ---- feature (K) tiling -------------------------------------------------
    use_vpu = D >= _VPU_MIN_D
    if not use_vpu:
        KT, TK = 1, D                                   # full-D block, no padding
    elif D <= max_tk:
        KT, TK = 1, _round_up(D, _LANES)
    else:
        TK = _round_up(max_tk, _LANES)
        KT = pl.cdiv(D, TK)
    ragged = use_vpu and (KT * TK != D)

    # ---- batch (N) tiling (sized by the actual input dtype) -----------------
    rows_per_tile = max(8, max_tile_bytes // max(1, TK * dtype_size))
    if rows_per_tile >= N:
        TN = N
        if N >= 1024:
            # Keep >= 2 row tiles for large batches so the "parallel" axis can
            # span both TensorCores on v7x (one cheap extra step elsewhere).
            TN = _round_up(pl.cdiv(N, 2), _LANES)
    else:
        TN = max(_LANES, (rows_per_tile // _LANES) * _LANES)
        TN = min(TN, N)
    NT = pl.cdiv(N, TN)

    # Tiny parameters: casting / reshaping these is free.
    wp = jnp.asarray(weight, jnp.float32)
    if bias is None:
        b = jnp.zeros((1,), jnp.float32)
    else:
        b = jnp.asarray(bias, jnp.float32).reshape(1)

    cost = pl.CostEstimate(
        flops=2 * N * D,
        transcendentals=N,
        bytes_accessed=N * D * dtype_size + D * 4 + N * 4,
    )

    out_shape = jax.ShapeDtypeStruct((NT, 1, TN), jnp.float32)
    bias_spec = pl.BlockSpec(memory_space=pltpu.MemorySpace.SMEM)

    if not use_vpu:
        grid = (NT,)
        in_specs = [
            pl.BlockSpec((TN, TK), lambda i: (i, 0)),        # x row tile
            pl.BlockSpec((1, TK), lambda i: (0, 0)),         # weight (resident)
            bias_spec,
        ]
        out_specs = pl.BlockSpec((1, 1, TN), lambda i: (i, 0, 0))
        scratch_shapes = []
        kernel = _mxu_kernel
        dim_sem = ("parallel",)
    else:
        grid = (NT, KT)
        in_specs = [
            pl.BlockSpec((TN, TK), lambda i, k: (i, k)),     # x tile
            pl.BlockSpec((1, TK), lambda i, k: (0, k)),      # weight slice
            bias_spec,
        ]
        out_specs = pl.BlockSpec((1, 1, TN), lambda i, k: (i, 0, 0))
        k_tiled = KT > 1
        scratch_shapes = ([pltpu.VMEM((TN, _LANES), jnp.float32)] if k_tiled else [])
        kernel = functools.partial(
            _vpu_kernel, n_chunks=TK // _LANES, tile_k=TK, d_total=D,
            k_tiled=k_tiled, ragged=ragged)
        dim_sem = ("parallel", "arbitrary")

    out = pl.pallas_call(
        kernel,
        out_shape=out_shape,
        grid_spec=pltpu.PrefetchScalarGridSpec(
            num_scalar_prefetch=0,
            grid=grid,
            in_specs=in_specs,
            out_specs=out_specs,
            scratch_shapes=scratch_shapes,
        ),
        compiler_params=pltpu.CompilerParams(
            dimension_semantics=dim_sem,
            vmem_limit_bytes=vmem_limit,
        ),
        cost_estimate=cost,
    )(x2, wp, b)

    res = out.reshape(NT * TN)[:N]                 # drop garbage tail rows
    # torch .squeeze(): output had shape lead_shape + (1,); squeeze all 1-dims.
    return jnp.squeeze(res.reshape(lead_shape + (1,)))


# --------------------------------------------------------------------------- #
# Self-test
# --------------------------------------------------------------------------- #
if __name__ == "__main__":
    key = jax.random.PRNGKey(0)
    ks = jax.random.split(key, 12)

    def ref_forward(x, w, b):
        logits = jnp.dot(x.astype(jnp.float32), jnp.asarray(w, jnp.float32).T,
                         precision=lax.Precision.HIGHEST)
        if b is not None:
            logits = logits + jnp.asarray(b, jnp.float32)
        return jax.nn.sigmoid(logits).reshape(x.shape[0])

    ATOL = RTOL = 2e-3

    # Case 1: module defaults (use_bias=False), tiny shapes -> MXU path, NT=1.
    N, D = 8, 32
    x = jax.random.normal(ks[0], (N, D), dtype=jnp.float32)
    bound = 1.0 / float(D) ** 0.5
    w = jax.random.uniform(ks[1], (1, D), jnp.float32, -bound, bound)
    y = jax.block_until_ready(logreg_forward(x, w))
    assert y.shape == (N,)
    assert jnp.allclose(y, ref_forward(x, w, None), atol=ATOL, rtol=RTOL)

    # Case 2: bias, small forced tiles -> MXU path, multiple row tiles with an
    # unpadded batch tail (garbage rows sliced off).
    N, D = 300, 192
    x = jax.random.normal(ks[2], (N, D), dtype=jnp.float32)
    bound = 1.0 / float(D) ** 0.5
    w = jax.random.uniform(ks[3], (1, D), jnp.float32, -bound, bound)
    b = jax.random.uniform(ks[4], (1,), jnp.float32, -bound, bound)
    y = jax.block_until_ready(logreg_forward(x, w, b, max_tile_bytes=128 * 1024))
    assert y.shape == (N,)
    assert jnp.allclose(y, ref_forward(x, w, b), atol=ATOL, rtol=RTOL)

    # Case 3: D >= 256, multiple of 128 -> VPU chunked path, no accumulator scratch.
    N, D = 64, 1536
    x = jax.random.normal(ks[5], (N, D), dtype=jnp.float32)
    bound = 1.0 / float(D) ** 0.5
    w = jax.random.uniform(ks[6], (1, D), jnp.float32, -bound, bound)
    y = jax.block_until_ready(logreg_forward(x, w))
    assert y.shape == (N,)
    assert jnp.allclose(y, ref_forward(x, w, None), atol=ATOL, rtol=RTOL)

    # Case 4: bf16 input, ragged D (not a multiple of 128) -> VPU path with
    # in-kernel tail masking; x stays bf16 end-to-end (no wrapper upcast).
    N, D = 48, 700
    x = jax.random.normal(ks[7], (N, D), dtype=jnp.bfloat16)
    bound = 1.0 / float(D) ** 0.5
    w = jax.random.uniform(ks[8], (1, D), jnp.float32, -bound, bound)
    b = jax.random.uniform(ks[9], (1,), jnp.float32, -bound, bound)
    y = jax.block_until_ready(logreg_forward(x, w, b))
    assert y.shape == (N,)
    assert jnp.allclose(y, ref_forward(x, w, b), atol=ATOL, rtol=RTOL)

    # Case 5: force K tiling (KT > 1) with a ragged tail -> VPU path with the
    # (TN, 128) f32 accumulator scratch carried over the "arbitrary" K axis.
    N, D = 40, 1000
    x = jax.random.normal(ks[10], (N, D), dtype=jnp.float32)
    bound = 1.0 / float(D) ** 0.5
    w = jax.random.uniform(ks[11], (1, D), jnp.float32, -bound, bound)
    y = jax.block_until_ready(logreg_forward(x, w, max_tk=512))
    assert y.shape == (N,)
    assert jnp.allclose(y, ref_forward(x, w, None), atol=ATOL, rtol=RTOL)

    print("KERNEL_OK")
</pallas_src>

<mosaic_0001>
module attributes {stable_mosaic.version = 11 : i64} {
  func.func @_mxu_kernel(%arg0: i32, %arg1: memref<8x32xf32, #tpu.memory_space<vmem>>, %arg2: memref<1x32xf32, #tpu.memory_space<vmem>>, %arg3: memref<1xf32, #tpu.memory_space<smem>>, %arg4: memref<1x1x8xf32, #tpu.memory_space<vmem>>) attributes {dimension_semantics = [#tpu.dimension_semantics<parallel>], iteration_bounds = array<i64: 1>, scalar_prefetch = 0 : i64, scratch_operands = 0 : i64, tpu.core_type = #tpu.core_type<tc>, window_params = [{transform_indices = @transform_0, window_bounds = array<i64: 8, 32>}, {pipeline_mode = #tpu.pipeline_mode<synchronous>, transform_indices = @transform_1, window_bounds = array<i64: 1, 32>}, {transform_indices = @transform_2, window_bounds = array<i64: 1>}, {transform_indices = @transform_3, window_bounds = array<i64: 1, 1, 8>}]} {
    %c0 = arith.constant 0 : index
    %c0_0 = arith.constant 0 : index
    %0 = vector.load %arg2[%c0, %c0_0] : memref<1x32xf32, #tpu.memory_space<vmem>>, vector<1x32xf32>
    %c0_1 = arith.constant 0 : index
    %c0_2 = arith.constant 0 : index
    %1 = vector.load %arg1[%c0_1, %c0_2] : memref<8x32xf32, #tpu.memory_space<vmem>>, vector<8x32xf32>
    %cst = arith.constant dense<0.000000e+00> : vector<1x8xf32>
    %2 = tpu.matmul %0, %1, %cst {dimension_numbers = #tpu.dot_dimension_numbers<[1], [1], [0], [0], [0, 0, 1, 0], [], []>} : vector<1x32xf32>, vector<8x32xf32>, vector<1x8xf32> -> vector<1x8xf32>
    %c0_3 = arith.constant 0 : index
    %3 = memref.load %arg3[%c0_3] : memref<1xf32, #tpu.memory_space<smem>>
    %4 = vector.broadcast %3 : f32 to vector<1x8xf32>
    %5 = arith.addf %2, %4 : vector<1x8xf32>
    %6 = arith.negf %5 : vector<1x8xf32>
    %7 = math.exp %6 : vector<1x8xf32>
    %cst_4 = arith.constant 1.000000e+00 : f32
    %8 = vector.broadcast %cst_4 : f32 to vector<1x8xf32>
    %9 = arith.addf %8, %7 : vector<1x8xf32>
    %10 = arith.divf %8, %9 : vector<1x8xf32>
    %c0_5 = arith.constant 0 : index
    %c0_6 = arith.constant 0 : index
    %c0_7 = arith.constant 0 : index
    %11 = vector.load %arg4[%c0_5, %c0_6, %c0_7] : memref<1x1x8xf32, #tpu.memory_space<vmem>>, vector<1x1x8xf32>
    %12 = vector.shape_cast %11 : vector<1x1x8xf32> to vector<1x8xf32>
    %13 = vector.shape_cast %10 : vector<1x8xf32> to vector<1x1x8xf32>
    tpu.vector_store %arg4[%c0_5, %c0_6, %c0_7], %13 {strides = array<i32>} : memref<1x1x8xf32, #tpu.memory_space<vmem>>, vector<1x1x8xf32>,
    return
  }
  func.func @transform_0(%arg0: i32) -> (i32, i32) {
    %c0_i32 = arith.constant 0 : i32
    %c0_i32_0 = arith.constant 0 : i32
    return %arg0, %c0_i32 : i32, i32
  }
  func.func @transform_1(%arg0: i32) -> (i32, i32) {
    %c0_i32 = arith.constant 0 : i32
    %c0_i32_0 = arith.constant 0 : i32
    %c0_i32_1 = arith.constant 0 : i32
    return %c0_i32, %c0_i32_0 : i32, i32
  }
  func.func @transform_2(%arg0: i32) -> i32 {
    %c0_i32 = arith.constant 0 : i32
    %c0_i32_0 = arith.constant 0 : i32
    return %c0_i32 : i32
  }
  func.func @transform_3(%arg0: i32) -> (i32, i32, i32) {
    %c0_i32 = arith.constant 0 : i32
    %c0_i32_0 = arith.constant 0 : i32
    %c0_i32_1 = arith.constant 0 : i32
    return %arg0, %c0_i32, %c0_i32_0 : i32, i32, i32
  }
}

</mosaic_0001>

<bundles_post_ra>
// kernel: tpu_custom_call.1
= control target key start
LH: loop header
LB: loop body
LE: loop exit
PB: predicated region body
PF: predicated region fallthrough
CT: control target
= control target key end

     0   :  { %9 = vsyncpa [#allocation4], 0  ;;  %s230_s0 = inlined_call_operand.hbm [shape: f32[8,32], index: 0, kind: input, shape index: {}]   ;;  %s231_s1 = inlined_call_operand.vmem [shape: f32[1,32], index: 1, kind: input, shape index: {}]   ;;  %s232_s2 = inlined_call_operand.<no memory space> [shape: f32[1], index: 2, kind: input, shape index: {}]   ;;  %s233_s3 = inlined_call_operand.hbm [shape: f32[1,1,8], index: 3, kind: output, shape index: {}]  }
   0x1   :  { %10 = vsyncpa [#allocation5], 0  ;;  %s194_s12 = smov [#allocation3]  }
   0x2   :  { %s17_s13 = sshll.u32 %s194_s12, 4  ;;  %s18_s13 = int_to_ptr.vmem [resolvable:$true] %s17_s13 }
   0x3   :  { %s158_s14 = scalar_lea.vmem %s18_s13, 128  ;;  %p163_p1 = scmp.lt.s32.totalorder %s18_s13, %s18_s13 }
   0x4   :  { %p159_p0 = scmp.ne.s32.totalorder %s18_s13, %s158_s14  ;;  %p164_p2 = scmp.lt.s32.totalorder %s158_s14, %s158_s14 }
   0x6   :  { %p165_p3 = por %p164_p2, %p163_p1 }
   0x8   :  { %p166_p4 = pnand %p165_p3, %p159_p0 }
   0xa   :  { %169 = shalt.err (!%p166_p4)
}
   0xb   :  { %20 = dma.hbm_to_vmem [thread:$0]  %s230_s0, 128, %s18_s13, [#allocation4]  }
   0xc   :  { %190 = dma.done.wait [#allocation4], 128  }
   0xd   :  { %191 = vsyncadd [#allocation4], 4294967168  ;;  %v195_v0 = vmov 0.0   ;;  %vm196_vm0 = vmmov 0   ;;  %vm32_vm1 = vcmask 261120   ;;  %v29_v1 = vld [vmem:[#allocation3] sm:$0xff]  ;;  %v31_v3 = vstv %s232_s2 }
   0xe   :  { %137 = vmatprep.subr.mxu0 %v195_v0  ;;  %139 = vmatprep.mubr.msk.f32.mxu0 %vm196_vm0, %v195_v0  ;;  %v28_v2 = vld [vmem:[%s231_s1] sm:$0x1]  ;;  %s197_s0 = smov [#allocation6]   ;;  %vm115_vm2 = vcmask 57344  }
   0xf   :  { %138 = vmatpush3.xpose.msk.msra.mxu0 %vm32_vm1, %v29_v1  ;;  %s123_s21 = sshll.u32 %s197_s0, 4  ;;  %s124_s21 = int_to_ptr.vmem [resolvable:$true] %s123_s21 }
  0x10   :  { %s170_s1 = scalar_lea.vmem %s124_s21, 16  ;;  %s174_s22 = scalar_lea.vmem %s124_s21, 32 }
  0x11   :  { %p171_p5 = scmp.ne.s32.totalorder %s124_s21, %s170_s1  ;;  %p175_p6 = scmp.lt.s32.totalorder %s124_s21, %s124_s21 }
  0x12   :  { %140 = vmatmul.mubr.msk.f32.vlgmr.msra.gmra.mxu0 %vm32_vm1, %v28_v2  ;;  %p176_p7 = scmp.lt.s32.totalorder %s174_s22, %s170_s1 }
  0x14   :  { %p177_p8 = por %p176_p7, %p175_p6 }
  0x16   :  { %p178_p9 = pnand %p177_p8, %p171_p5 }
  0xd2   :  { %v105_v4 = vpop.f32.mrf.mxu0 }
  0xd3   :  { %v106_v5 = vadd.f32 %v105_v4, %v31_v3 }
  0xd4   :  { %v141_v6 = vpop.f32.mrf.mxu0 }
  0xd5   :  { %v134_v7 = vmul.f32 -1.442695, %v106_v5 }
  0xd7   :  { %146 = vpow2.f32 %v134_v7 }
  0xe4   :  { %v147_v8 = vpop.eup %146 }
  0xe5   :  { %v112_v9 = vadd.f32 1.0, %v147_v8 }
  0xe7   :  { %148 = vrcp.f32 %v112_v9 }
  0xf4   :  { %v149_v10 = vpop.eup %148 }
  0xf5   :  { %116 = vst.msk [vmem:[#allocation6] sm:$0x1] %vm115_vm2, %v149_v10 }
  0xf6   :  { %181 = shalt.err (!%p178_p9)
}
  0xf7   :  { %126 = dma.vmem_to_hbm [thread:$0]  %s124_s21, 16, %s233_s3, [#allocation5]  }
  0xf8   :  { %192 = dma.done.wait [#allocation5], 16  }
  0xf9   :  { %193 = vsyncadd [#allocation5], 4294967280 }
  0xfa   :  { %130 = vsyncpa [#allocation4], 1 }
  0xfb   :  { %131 = vsyncpa [#allocation5], 1 }

</bundles_post_ra>
